<compile_context>
chip_gen: v5e
topology: v5e:2x2
jax: 0.10.0
libtpu: 0.0.40
codegen_flags: <defaults>
</compile_context>

<pallas_src>
import functools

import jax
import jax.numpy as jnp
from jax.experimental import pallas as pl
from jax.experimental.pallas import tpu as pltpu


def _align(n, m):
    return (n + m - 1) // m * m


def _cnn_kernel(x_ref, p_ref, o_ref, *, B, POOL, P, V, KV, H,
                off_wc, off_w1, off_w2, off_b):
    """Whole-model forward, fully VMEM-resident, batched over B.

    x_ref : (POOL*B, P*K*V)  pool-aware im2col slab
    p_ref : (R, C)           packed parameters (conv W, w1, w2, biases)
    o_ref : (B, 1)
    """
    PV = P * V

    # --- unpack parameters (static slices of the single packed VMEM ref) ---
    wc = p_ref[off_wc:off_wc + P * KV, :PV]        # block-diag conv weight (P*K*V, P*V)
    w1 = p_ref[off_w1:off_w1 + PV, :H]             # dense_hidn weight      (P*V, H)
    w2 = p_ref[off_w2:off_w2 + H, 0:1]             # dense_out weight       (H, 1)
    bias = p_ref[off_b:off_b + 3, :]               # rows: conv_b / b1 / b2 (read once)
    cb = bias[0:1, :PV]                            # (1, P*V)
    b1 = bias[1:2, :H]                             # (1, H)
    b2 = bias[2:3, 0:1]                            # (1, 1)

    # --- Conv1d + bias + ReLU: ONE matmul for all (batch, window, position) ---
    x = x_ref[...]                                                    # (POOL*B, P*K*V)
    conv = jnp.dot(x, wc, preferred_element_type=jnp.float32) + cb    # (POOL*B, P*V)
    r = jnp.maximum(conv, 0.0)

    # --- MaxPool1d(POOL): pairwise VALU maxima over contiguous row groups ---
    m = r[0:B, :]
    for w in range(1, POOL):                       # POOL small & static -> unrolled
        m = jnp.maximum(m, r[w * B:(w + 1) * B, :])                   # (B, P*V)

    # --- dense_hidn + dense_out ---
    # TODO(synk): nn.Dropout(0.3) is identity at inference time; not applied here.
    h = jnp.dot(m, w1, preferred_element_type=jnp.float32) + b1       # (B, H)
    o_ref[...] = jnp.dot(h, w2, preferred_element_type=jnp.float32) + b2


def cnn_forward(x, params, *, kernel_size=3, pool=5):
    """Pallas implementation of CNN.forward. x: (B, vocab_size, input_dim) one-hot."""
    conv_w, conv_b, w1, b1, w2, b2 = (params[k] for k in
                                      ("conv_w", "conv_b", "w1", "b1", "w2", "b2"))
    B, V, L = x.shape
    K = kernel_size
    POOL = pool
    pad = (K - 1) // 2
    L_out = L + 2 * pad - K + 1            # conv output length (== L for odd K)
    P = L_out // POOL                      # pooled positions (MaxPool truncates)
    H = b1.shape[0]
    KV = K * V
    PV = P * V

    # ---------- plain-JAX glue: layout plumbing only (no hot-path math) ----------
    # NCL -> NLC, zero-pad, gather the pool-aware im2col slab:
    #   slab[w*B + b, (p*K + k)*V + i] = x_pad[b, p*POOL + w + k, i]
    x_blv = jnp.transpose(x, (0, 2, 1)).astype(jnp.float32)           # (B, L, V)
    x_pad = jnp.pad(x_blv, ((0, 0), (pad, pad), (0, 0)))              # (B, L+2*pad, V)
    pos = (jnp.arange(P)[:, None, None] * POOL
           + jnp.arange(POOL)[None, :, None]
           + jnp.arange(K)[None, None, :])                            # (P, POOL, K)
    g = x_pad[:, pos, :]                                              # (B, P, POOL, K, V)
    slab = jnp.transpose(g, (2, 0, 1, 3, 4)).reshape(POOL * B, P * KV)

    # conv weight -> block-diagonal (P*K*V, P*V); output lane order is p*V + o
    wck = jnp.transpose(conv_w, (2, 1, 0)).reshape(KV, V).astype(jnp.float32)
    w_conv = jnp.einsum('pq,ab->paqb', jnp.eye(P, dtype=jnp.float32), wck)
    w_conv = w_conv.reshape(P * KV, PV)
    # dense_hidn weight regrouped from PyTorch's channel-major flatten (v*P + p)
    # to the kernel's lane order (p*V + v)
    w1k = jnp.transpose(w1.reshape(H, V, P), (2, 1, 0)).reshape(PV, H).astype(jnp.float32)
    w2k = w2.T.astype(jnp.float32)                                    # (H, 1)
    cbk = jnp.tile(conv_b.astype(jnp.float32), P)                     # (P*V,)
    b1k = b1.astype(jnp.float32)                                      # (H,)
    b2k = b2.astype(jnp.float32)                                      # (1,)

    # pack all parameters into ONE padded f32 array:
    #   8-row-aligned sections, lane dim padded to a multiple of 128 so the
    #   single HBM->VMEM DMA is lane-dense.
    C = _align(max(PV, H, 1), 128)
    off_wc = 0
    off_w1 = _align(P * KV, 8)
    off_w2 = _align(off_w1 + PV, 8)
    off_b = _align(off_w2 + H, 8)
    R = _align(off_b + 3, 8)
    pk = jnp.zeros((R, C), jnp.float32)
    pk = pk.at[off_wc:off_wc + P * KV, :PV].set(w_conv)
    pk = pk.at[off_w1:off_w1 + PV, :H].set(w1k)
    pk = pk.at[off_w2:off_w2 + H, 0:1].set(w2k)
    pk = pk.at[off_b, :PV].set(cbk)
    pk = pk.at[off_b + 1, :H].set(b1k)
    pk = pk.at[off_b + 2, 0].set(b2k[0])

    kernel = functools.partial(_cnn_kernel, B=B, POOL=POOL, P=P, V=V, KV=KV, H=H,
                               off_wc=off_wc, off_w1=off_w1, off_w2=off_w2, off_b=off_b)
    vmem = lambda: pl.BlockSpec(memory_space=pltpu.MemorySpace.VMEM)

    flops = 2 * ((POOL * B) * (P * KV) * PV + B * PV * H + B * H * 1)
    bytes_accessed = 4 * (slab.size + pk.size + B * 1)

    # Grid-less single invocation: all operands (a few tens of KiB) are
    # VMEM-resident, so the whole forward is one pipelined DMA + compute step.
    # TODO(synk): if B grows large, tile the batch with grid=(B//B_tile,) and
    # dimension_semantics=("parallel",) so v7x shards across its 2 TensorCores.
    return pl.pallas_call(
        kernel,
        out_shape=jax.ShapeDtypeStruct((B, 1), jnp.float32),
        in_specs=[vmem(), vmem()],
        out_specs=vmem(),
        cost_estimate=pl.CostEstimate(flops=flops, transcendentals=0,
                                      bytes_accessed=bytes_accessed),
    )(slab, pk)


def cnn_reference(x, params, *, kernel_size=3, pool=5):
    """Pure-JAX reference matching the PyTorch forward (eval mode)."""
    conv_w, conv_b, w1, b1, w2, b2 = (params[k] for k in
                                      ("conv_w", "conv_b", "w1", "b1", "w2", "b2"))
    B, V, L = x.shape
    pad = (kernel_size - 1) // 2
    xp = jnp.pad(x.astype(jnp.float32), ((0, 0), (0, 0), (pad, pad)))
    conv = jnp.zeros((B, V, L), jnp.float32)
    for k in range(kernel_size):
        conv = conv + jnp.einsum('oi,bil->bol', conv_w[:, :, k], xp[:, :, k:k + L])
    conv = conv + conv_b[None, :, None]
    r = jax.nn.relu(conv)
    P = L // pool
    pooled = r[:, :, :P * pool].reshape(B, V, P, pool).max(axis=-1)
    flat = pooled.reshape(B, V * P)
    h = flat @ w1.T + b1          # dropout is identity at inference
    return h @ w2.T + b2


if __name__ == "__main__":
    # shapes implied by the module: inputs (batch, vocab_size, input_dim)
    B, V, L, H, K = 2, 4, 20, 32, 3       # input_dim=20 (divisible by pool=5)
    F_in = V * (L // 5)

    key = jax.random.PRNGKey(0)
    ks = jax.random.split(key, 8)
    tokens = jax.random.randint(ks[0], (B, L), 0, V)
    x = jnp.transpose(jax.nn.one_hot(tokens, V, dtype=jnp.float32), (0, 2, 1))  # (B, V, L)

    params = dict(
        conv_w=0.1 * jax.random.normal(ks[1], (V, V, K), jnp.float32),   # Conv1d weight (O, I, K)
        conv_b=0.1 * jax.random.normal(ks[2], (V,), jnp.float32),
        w1=0.1 * jax.random.normal(ks[3], (H, F_in), jnp.float32),       # Linear(F_in, H) weight
        b1=0.1 * jax.random.normal(ks[4], (H,), jnp.float32),
        w2=0.1 * jax.random.normal(ks[5], (1, H), jnp.float32),          # Linear(H, 1) weight
        b2=0.1 * jax.random.normal(ks[6], (1,), jnp.float32),
    )

    out = jax.block_until_ready(jax.jit(cnn_forward)(x, params))
    ref = cnn_reference(x, params)
    assert out.shape == (B, 1), out.shape
    assert jnp.allclose(out, ref, atol=1e-4, rtol=1e-4), (out, ref)
    print("KERNEL_OK")
</pallas_src>

<mosaic_0001>
module attributes {stable_mosaic.version = 11 : i64} {
  func.func @_cnn_kernel(%arg0: memref<10x48xf32, #tpu.memory_space<vmem>>, %arg1: memref<104x128xf32, #tpu.memory_space<vmem>>, %arg2: memref<2x1xf32, #tpu.memory_space<vmem>>) attributes {dimension_semantics = [], scalar_prefetch = 0 : i64, scratch_operands = 0 : i64, tpu.core_type = #tpu.core_type<tc>} {
    %c0 = arith.constant 0 : index
    %c0_0 = arith.constant 0 : index
    %0 = vector.load %arg1[%c0, %c0_0] : memref<104x128xf32, #tpu.memory_space<vmem>>, vector<48x16xf32>
    %c48 = arith.constant 48 : index
    %c0_1 = arith.constant 0 : index
    %1 = vector.load %arg1[%c48, %c0_1] : memref<104x128xf32, #tpu.memory_space<vmem>>, vector<16x32xf32>
    %c64 = arith.constant 64 : index
    %c0_2 = arith.constant 0 : index
    %2 = vector.load %arg1[%c64, %c0_2] : memref<104x128xf32, #tpu.memory_space<vmem>>, vector<32x1xf32>
    %c96 = arith.constant 96 : index
    %c0_3 = arith.constant 0 : index
    %3 = vector.load %arg1[%c96, %c0_3] : memref<104x128xf32, #tpu.memory_space<vmem>>, vector<3x128xf32>
    %4 = vector.extract_strided_slice %3 {offsets = [0, 0], sizes = [1, 16], strides = [1, 1]} : vector<3x128xf32> to vector<1x16xf32>
    %5 = vector.extract_strided_slice %3 {offsets = [1, 0], sizes = [1, 32], strides = [1, 1]} : vector<3x128xf32> to vector<1x32xf32>
    %6 = vector.extract_strided_slice %3 {offsets = [2, 0], sizes = [1, 1], strides = [1, 1]} : vector<3x128xf32> to vector<1x1xf32>
    %c0_4 = arith.constant 0 : index
    %c0_5 = arith.constant 0 : index
    %7 = vector.load %arg0[%c0_4, %c0_5] : memref<10x48xf32, #tpu.memory_space<vmem>>, vector<10x48xf32>
    %cst = arith.constant dense<0.000000e+00> : vector<10x16xf32>
    %8 = tpu.matmul %7, %0, %cst {dimension_numbers = #tpu.dot_dimension_numbers<[1], [0], [0], [1], [0, 0, 1, 1], [], []>} : vector<10x48xf32>, vector<48x16xf32>, vector<10x16xf32> -> vector<10x16xf32>
    %9 = vector.broadcast %4 : vector<1x16xf32> to vector<10x16xf32>
    %10 = arith.addf %8, %9 : vector<10x16xf32>
    %cst_6 = arith.constant 0.000000e+00 : f32
    %11 = vector.broadcast %cst_6 : f32 to vector<10x16xf32>
    %12 = arith.maximumf %10, %11 : vector<10x16xf32>
    %13 = vector.extract_strided_slice %12 {offsets = [0, 0], sizes = [2, 16], strides = [1, 1]} : vector<10x16xf32> to vector<2x16xf32>
    %14 = vector.extract_strided_slice %12 {offsets = [2, 0], sizes = [2, 16], strides = [1, 1]} : vector<10x16xf32> to vector<2x16xf32>
    %15 = arith.maximumf %13, %14 : vector<2x16xf32>
    %16 = vector.extract_strided_slice %12 {offsets = [4, 0], sizes = [2, 16], strides = [1, 1]} : vector<10x16xf32> to vector<2x16xf32>
    %17 = arith.maximumf %15, %16 : vector<2x16xf32>
    %18 = vector.extract_strided_slice %12 {offsets = [6, 0], sizes = [2, 16], strides = [1, 1]} : vector<10x16xf32> to vector<2x16xf32>
    %19 = arith.maximumf %17, %18 : vector<2x16xf32>
    %20 = vector.extract_strided_slice %12 {offsets = [8, 0], sizes = [2, 16], strides = [1, 1]} : vector<10x16xf32> to vector<2x16xf32>
    %21 = arith.maximumf %19, %20 : vector<2x16xf32>
    %cst_7 = arith.constant dense<0.000000e+00> : vector<2x32xf32>
    %22 = tpu.matmul %21, %1, %cst_7 {dimension_numbers = #tpu.dot_dimension_numbers<[1], [0], [0], [1], [0, 0, 1, 1], [], []>} : vector<2x16xf32>, vector<16x32xf32>, vector<2x32xf32> -> vector<2x32xf32>
    %23 = vector.broadcast %5 : vector<1x32xf32> to vector<2x32xf32>
    %24 = arith.addf %22, %23 : vector<2x32xf32>
    %cst_8 = arith.constant dense<0.000000e+00> : vector<2x1xf32>
    %25 = tpu.matmul %24, %2, %cst_8 {dimension_numbers = #tpu.dot_dimension_numbers<[1], [0], [0], [1], [0, 0, 1, 1], [], []>} : vector<2x32xf32>, vector<32x1xf32>, vector<2x1xf32> -> vector<2x1xf32>
    %26 = vector.broadcast %6 : vector<1x1xf32> to vector<2x1xf32>
    %27 = arith.addf %25, %26 : vector<2x1xf32>
    %c0_9 = arith.constant 0 : index
    %c0_10 = arith.constant 0 : index
    %28 = vector.load %arg2[%c0_9, %c0_10] : memref<2x1xf32, #tpu.memory_space<vmem>>, vector<2x1xf32>
    tpu.vector_store %arg2[%c0_9, %c0_10], %27 {strides = array<i32>} : memref<2x1xf32, #tpu.memory_space<vmem>>, vector<2x1xf32>,
    return
  }
}

</mosaic_0001>

<bundles_post_ra>
// kernel: tile.8
= control target key start
LH: loop header
LB: loop body
LE: loop exit
PB: predicated region body
PF: predicated region fallthrough
CT: control target
= control target key end

     0   :  { %s22_s0 = inlined_call_operand.vmem [shape: f32[4], index: 0, kind: input, shape index: {}]   ;;  %s23_s1 = inlined_call_operand.vmem [shape: f32[4,4], index: 1, kind: output, shape index: {}]  }
   0x1   :  { %v4_v0 = vld [vmem:[%s22_s0] ss:$0 sm:$0xff] }
   0x2   :  { %5 = vst [vmem:[%s23_s1] sm:$0xf] %v4_v0 }

// kernel: cnn_forward.1
= control target key start
LH: loop header
LB: loop body
LE: loop exit
PB: predicated region body
PF: predicated region fallthrough
CT: control target
= control target key end

     0   :  { %vm27_vm0 = vcmask 392192   ;;  %vm71_vm1 = vcmask 130048   ;;  %vm96_vm2 = vcmask 261120   ;;  %vm120_vm3 = vcmask 1024   ;;  %s199_s1 = inlined_call_operand.vmem [shape: f32[104,128], index: 1, kind: input, shape index: {}]   ;;  %s200_s0 = inlined_call_operand.vmem [shape: f32[10,48], index: 0, kind: input, shape index: {}]   ;;  %s201_s2 = inlined_call_operand.vmem [shape: f32[2,1], index: 2, kind: output, shape index: {}]  }
   0x1   :  { %v16_v0 = vld [vmem:[%s199_s1 + $0x28] sm:$0xff]  ;;  %v15_v1 = vld [vmem:[%s199_s1 + $0x20] sm:$0xff]  ;;  %v14_v2 = vld [vmem:[%s199_s1 + $0x18] sm:$0xff] }
   0x2   :  { %44 = vmatpush.msra.mxu0 %v16_v0  ;;  %130 = vmatpush.msra.mxu3 %v16_v0  ;;  %v13_v3 = vld [vmem:[%s199_s1 + $0x10] sm:$0xff]  ;;  %v12_v4 = vld [vmem:[%s199_s1 + $0x8] sm:$0xff]  ;;  %v11_v5 = vld [vmem:[%s199_s1] sm:$0xff] }
   0x3   :  { %v24_v6 = vld [vmem:[%s200_s0] sm:$0xff]  ;;  %v25_v7 = vld [vmem:[%s200_s0 + $0x8] sm:$0x3]  ;;  %v18_v8 = vld [vmem:[%s199_s1 + $0x38] sm:$0xff] }
   0x4   :  { %45 = vmatpush.msra.mxu0 %v15_v1  ;;  %131 = vmatpush.msra.mxu3 %v15_v1  ;;  %v17_v9 = vld [vmem:[%s199_s1 + $0x30] sm:$0xff]  ;;  %v22_v10 = vld [vmem:[%s199_s1 + $0x58] sm:$0xff]  ;;  %v23_v12 = vld [vmem:[%s199_s1 + $0x60] sm:$0x7] }
   0x5   :  { %89 = vmatpush.msra.mxu1 %v18_v8  ;;  %v21_v11 = vld [vmem:[%s199_s1 + $0x50] sm:$0xff]  ;;  %112 = vmatpush.msra.mxu2 %v22_v10  ;;  %v26_v13 = vperm.slane %v23_v12, 0  ;;  %v20_v27 = vld [vmem:[%s199_s1 + $0x48] sm:$0xff]  ;;  %v19_v28 = vld [vmem:[%s199_s1 + $0x40] sm:$0xff]  ;;  %v70_v29 = vperm.slane %v23_v12, 1  ;;  %v95_v32 = vperm.slane %v23_v12, 2 }
   0x6   :  { %46 = vmatpush.msra.mxu0 %v14_v2  ;;  %132 = vmatpush.msra.mxu3 %v14_v2 }
   0x7   :  { %90 = vmatpush.msra.mxu1 %v17_v9  ;;  %113 = vmatpush.msra.mxu2 %v21_v11 }
   0x8   :  { %47 = vmatpush.msra.mxu0 %v13_v3  ;;  %133 = vmatpush.msra.mxu3 %v13_v3 }
   0x9   :  { %114 = vmatpush.msra.mxu2 %v20_v27 }
   0xa   :  { %48 = vmatpush.msra.mxu0 %v12_v4  ;;  %134 = vmatpush.msra.mxu3 %v12_v4 }
   0xb   :  { %115 = vmatpush.msra.mxu2 %v19_v28 }
   0xc   :  { %49 = vmatpush.msra.mxu0 %v11_v5  ;;  %135 = vmatpush.msra.mxu3 %v11_v5 }
   0xd   :  { %126 = vmatmul.msk.f32.vlgmr.msra.gmra.mxu0 %vm27_vm0, %v24_v6  ;;  %127 = vmatmul.msk.f32.vlgmr.msra.gmra.mxu3 %vm27_vm0, %v25_v7 }
  0x8a   :  { %v51_v14 = vpop.f32.mrf.mxu0 }
  0x8b   :  { %v52_v15 = vadd.f32 %v51_v14, %v26_v13 }
  0x8d   :  { %v57_v16 = vmax.f32 %v52_v15, 0.0 }
  0x8f   :  { %v60_v17 = vrot.slane %v57_v16, 2  ;;  %v63_v21 = vrot.slane %v57_v16, 4  ;;  %v66_v24 = vrot.slane %v57_v16, 6 }
  0x90   :  { %v54_v18 = vpop.f32.mrf.mxu3 }
  0x91   :  { %v55_v19 = vadd.f32 %v54_v18, %v26_v13  ;;  %v62_v20 = vmax.f32 %v57_v16, %v60_v17 }
  0x93   :  { %v58_v22 = vmax.f32 %v55_v19, 0.0  ;;  %v65_v23 = vmax.f32 %v62_v20, %v63_v21 }
  0x95   :  { %v68_v25 = vmax.f32 %v65_v23, %v66_v24 }
  0x97   :  { %v69_v26 = vmax.f32 %v68_v25, %v58_v22 }
  0x99   :  { %128 = vmatmul.msk.f32.vlgmr.msra.gmra.mxu1 %vm71_vm1, %v69_v26 }
 0x116   :  { %v92_v30 = vpop.f32.mrf.mxu1 }
 0x117   :  { %v93_v31 = vadd.f32 %v92_v30, %v70_v29 }
 0x119   :  { %129 = vmatmul.msk.f32.vlgmr.msra.gmra.mxu2 %vm96_vm2, %v93_v31 }
 0x19c   :  { %v117_v33 = vpop.f32.mrf.mxu2 }
 0x19d   :  { %v118_v34 = vadd.f32 %v117_v33, %v95_v32 }
 0x19f   :  { %121 = vst.msk [vmem:[%s201_s2] sm:$0x3] %vm120_vm3, %v118_v34 }

</bundles_post_ra>
